<compile_context>
chip_gen: v7x
topology: tpu7x:2x2x1
jax: 0.10.0
libtpu: 0.0.40
codegen_flags: <defaults>
</compile_context>

<pallas_src>
import functools

import jax
import jax.numpy as jnp
from jax.experimental import pallas as pl
from jax.experimental.pallas import tpu as pltpu


def _mlp_kernel(x_ref, w1_ref, b1_ref, w2_ref, b2_ref, o_ref, *, compute_dtype):
    # Fused Linear -> ReLU -> (Dropout = identity in eval) -> Linear.
    x = x_ref[...].astype(compute_dtype)                       # MXU input dtype
    h = jnp.dot(x, w1_ref[...], preferred_element_type=jnp.float32)
    h = jnp.maximum(h + b1_ref[...], 0.0)                      # f32 epilogue (v5e-safe)
    # TODO(synk): training-mode Dropout(p=0.3) would need pltpu.prng_seed +
    # pltpu.stateful_bernoulli with inverted-dropout 1/(1-p) scaling; the
    # eval-mode forward is the identity, which is what is implemented here.
    y = jnp.dot(h.astype(compute_dtype), w2_ref[...],
                preferred_element_type=jnp.float32)
    o_ref[...] = (y + b2_ref[...]).astype(o_ref.dtype)


def _round_up(n, m):
    return ((n + m - 1) // m) * m


def _vmem_capacity_bytes():
    # Generation-aware physical VMEM (64 MiB on v7x, 128 MiB on v5e/v6e).
    try:
        return int(pltpu.get_tpu_info().vmem_capacity_bytes)
    except Exception:
        return 64 << 20  # conservative (v7x-sized) default if the query fails


def prepare_params(w1, b1, w2, b2, *, compute_dtype=jnp.bfloat16):
    """One-time weight prep: pad hidden dim to a lane multiple, cast matmul
    operands to the MXU dtype, keep biases in f32.  Exact: zero columns of w1
    give zero (post-ReLU) hidden activations, which hit zero rows of w2."""
    in_dim, hidden = w1.shape
    out_dim = w2.shape[1]
    hid_p = _round_up(hidden, 128)
    w1_p = jnp.zeros((in_dim, hid_p), compute_dtype).at[:, :hidden].set(
        w1.astype(compute_dtype))
    b1_p = jnp.zeros((1, hid_p), jnp.float32).at[:, :hidden].set(
        b1.reshape(1, hidden).astype(jnp.float32))
    w2_p = jnp.zeros((hid_p, out_dim), compute_dtype).at[:hidden, :].set(
        w2.astype(compute_dtype))
    b2_p = b2.reshape(1, out_dim).astype(jnp.float32)
    return w1_p, b1_p, w2_p, b2_p


def simple_nn_forward(x, params, *, tile_b=None):
    """x: [B, in_dim]; params from prepare_params(). Returns [B, out_dim]."""
    w1_p, b1_p, w2_p, b2_p = params
    B, in_dim = x.shape
    hid_p, out_dim = w2_p.shape
    compute_dtype = w1_p.dtype

    x_itemsize = jnp.dtype(x.dtype).itemsize
    c_itemsize = jnp.dtype(compute_dtype).itemsize

    # Per-row VMEM working set: double-buffered x/out tiles + f32 hidden
    # activation + compute-dtype casts of x and h.
    per_row_bytes = (2 * (in_dim + out_dim) * x_itemsize
                     + hid_p * (4 + c_itemsize)
                     + in_dim * c_itemsize)
    vmem_cap = _vmem_capacity_bytes()
    row_cap = max(8, ((vmem_cap // 4) // per_row_bytes) // 8 * 8)

    if tile_b is None:
        # Large tiles amortize per-grid-step overhead; keep >=4 grid steps when
        # possible (>=2 per TensorCore on v7x) so DMA overlaps compute per core.
        tile_b = min(4096, _round_up(max(B // 4, 8), 8))
    tile_b = max(8, _round_up(tile_b, 8))
    tile_b = min(tile_b, row_cap, _round_up(B, 8))

    B_p = _round_up(B, tile_b)
    grid = (B_p // tile_b,)

    # Only pad the batch if it is not tile-aligned (no feature padding at all).
    x_p = x if B_p == B else jnp.pad(x, ((0, B_p - B), (0, 0)))

    in_specs = [
        pl.BlockSpec((tile_b, in_dim), lambda i: (i, 0)),
        pl.BlockSpec((in_dim, hid_p), lambda i: (0, 0)),
        pl.BlockSpec((1, hid_p), lambda i: (0, 0)),
        pl.BlockSpec((hid_p, out_dim), lambda i: (0, 0)),
        pl.BlockSpec((1, out_dim), lambda i: (0, 0)),
    ]
    out_spec = pl.BlockSpec((tile_b, out_dim), lambda i: (i, 0))

    weight_bytes = ((w1_p.size + w2_p.size) * c_itemsize
                    + (b1_p.size + b2_p.size) * 4)
    vmem_limit = int(min(vmem_cap,
                         max(16 << 20,
                             2 * (weight_bytes + tile_b * per_row_bytes)
                             + (4 << 20))))

    cost = pl.CostEstimate(
        flops=2 * B_p * (in_dim * hid_p + hid_p * out_dim),
        transcendentals=0,
        bytes_accessed=int(B_p * in_dim * x_itemsize
                           + B_p * out_dim * x_itemsize
                           + weight_bytes),
    )

    out = pl.pallas_call(
        functools.partial(_mlp_kernel, compute_dtype=compute_dtype),
        out_shape=jax.ShapeDtypeStruct((B_p, out_dim), x.dtype),
        grid_spec=pltpu.PrefetchScalarGridSpec(
            num_scalar_prefetch=0,
            grid=grid,
            in_specs=in_specs,
            out_specs=out_spec,
        ),
        compiler_params=pltpu.CompilerParams(
            dimension_semantics=("parallel",),
            vmem_limit_bytes=vmem_limit,
        ),
        cost_estimate=cost,
    )(x_p, w1_p, b1_p, w2_p, b2_p)

    return out if B_p == B else out[:B]


def init_params(key, input_dim, hidden_dim, output_dim):
    """Deterministic init mimicking nn.Linear's uniform(-1/sqrt(fan_in), 1/sqrt(fan_in))."""
    k1, k2, k3, k4 = jax.random.split(key, 4)
    bound1 = 1.0 / jnp.sqrt(input_dim)
    bound2 = 1.0 / jnp.sqrt(hidden_dim)
    w1 = jax.random.uniform(k1, (input_dim, hidden_dim), jnp.float32, -bound1, bound1)
    b1 = jax.random.uniform(k2, (1, hidden_dim), jnp.float32, -bound1, bound1)
    w2 = jax.random.uniform(k3, (hidden_dim, output_dim), jnp.float32, -bound2, bound2)
    b2 = jax.random.uniform(k4, (1, output_dim), jnp.float32, -bound2, bound2)
    return w1, b1, w2, b2


def _reference(x, w1, b1, w2, b2):
    return jnp.maximum(x @ w1 + b1, 0.0) @ w2 + b2


if __name__ == "__main__":
    # Small shapes consistent with the module: batch=8, input_dim=32, hidden=64, out=16.
    batch, input_dim, hidden_dim, output_dim = 8, 32, 64, 16

    key = jax.random.PRNGKey(0)
    kx, kp, kx2 = jax.random.split(key, 3)
    x = jax.random.normal(kx, (batch, input_dim), jnp.float32)
    w1, b1, w2, b2 = init_params(kp, input_dim, hidden_dim, output_dim)
    ref = _reference(x, w1, b1, w2, b2)

    # 1) Exact f32 path (bit-faithful to the PyTorch eval-mode forward).
    params_f32 = prepare_params(w1, b1, w2, b2, compute_dtype=jnp.float32)
    out_f32 = jax.block_until_ready(simple_nn_forward(x, params_f32))
    assert out_f32.shape == (batch, output_dim)
    assert jnp.allclose(out_f32, ref, atol=1e-5, rtol=1e-4)

    # 2) bf16-MXU path (f32 accumulation, f32 epilogue). Weight prep is hoisted
    #    out of the per-call path and reused across calls.
    params_bf16 = prepare_params(w1, b1, w2, b2)
    out_bf16 = jax.block_until_ready(simple_nn_forward(x, params_bf16))
    assert jnp.allclose(out_bf16, ref, atol=5e-2, rtol=5e-2)

    # 3) Larger batch: exercises batch tiling (>=4 grid steps) with reused params.
    x_big = jax.random.normal(kx2, (1024, input_dim), jnp.float32)
    out_big = jax.block_until_ready(simple_nn_forward(x_big, params_bf16))
    ref_big = _reference(x_big, w1, b1, w2, b2)
    assert out_big.shape == (1024, output_dim)
    assert jnp.allclose(out_big, ref_big, atol=5e-2, rtol=5e-2)

    # 4) Non-tile-aligned batch: exercises the (only-when-needed) batch pad/slice.
    out_odd = jax.block_until_ready(simple_nn_forward(x_big[:1000], params_bf16))
    assert out_odd.shape == (1000, output_dim)
    assert jnp.allclose(out_odd, ref_big[:1000], atol=5e-2, rtol=5e-2)

    print("KERNEL_OK")
</pallas_src>

<mosaic_0001>
module attributes {stable_mosaic.version = 11 : i64} {
  func.func @_mlp_kernel(%arg0: i32, %arg1: memref<8x32xf32, #tpu.memory_space<vmem>>, %arg2: memref<32x128xf32, #tpu.memory_space<vmem>>, %arg3: memref<1x128xf32, #tpu.memory_space<vmem>>, %arg4: memref<128x16xf32, #tpu.memory_space<vmem>>, %arg5: memref<1x16xf32, #tpu.memory_space<vmem>>, %arg6: memref<8x16xf32, #tpu.memory_space<vmem>>) attributes {dimension_semantics = [#tpu.dimension_semantics<parallel>], iteration_bounds = array<i64: 1>, scalar_prefetch = 0 : i64, scratch_operands = 0 : i64, tpu.core_type = #tpu.core_type<tc>, window_params = [{transform_indices = @transform_0, window_bounds = array<i64: 8, 32>}, {pipeline_mode = #tpu.pipeline_mode<synchronous>, transform_indices = @transform_1, window_bounds = array<i64: 32, 128>}, {pipeline_mode = #tpu.pipeline_mode<synchronous>, transform_indices = @transform_2, window_bounds = array<i64: 1, 128>}, {pipeline_mode = #tpu.pipeline_mode<synchronous>, transform_indices = @transform_3, window_bounds = array<i64: 128, 16>}, {pipeline_mode = #tpu.pipeline_mode<synchronous>, transform_indices = @transform_4, window_bounds = array<i64: 1, 16>}, {transform_indices = @transform_5, window_bounds = array<i64: 8, 16>}]} {
    %c0 = arith.constant 0 : index
    %c0_0 = arith.constant 0 : index
    %0 = vector.load %arg1[%c0, %c0_0] : memref<8x32xf32, #tpu.memory_space<vmem>>, vector<8x32xf32>
    %c0_1 = arith.constant 0 : index
    %c0_2 = arith.constant 0 : index
    %1 = vector.load %arg2[%c0_1, %c0_2] : memref<32x128xf32, #tpu.memory_space<vmem>>, vector<32x128xf32>
    %cst = arith.constant dense<0.000000e+00> : vector<8x128xf32>
    %2 = tpu.matmul %0, %1, %cst {dimension_numbers = #tpu.dot_dimension_numbers<[1], [0], [0], [1], [0, 0, 1, 1], [], []>} : vector<8x32xf32>, vector<32x128xf32>, vector<8x128xf32> -> vector<8x128xf32>
    %c0_3 = arith.constant 0 : index
    %c0_4 = arith.constant 0 : index
    %3 = vector.load %arg3[%c0_3, %c0_4] : memref<1x128xf32, #tpu.memory_space<vmem>>, vector<1x128xf32>
    %4 = vector.broadcast %3 : vector<1x128xf32> to vector<8x128xf32>
    %5 = arith.addf %2, %4 : vector<8x128xf32>
    %cst_5 = arith.constant 0.000000e+00 : f32
    %6 = vector.broadcast %cst_5 : f32 to vector<8x128xf32>
    %7 = arith.maximumf %5, %6 : vector<8x128xf32>
    %c0_6 = arith.constant 0 : index
    %c0_7 = arith.constant 0 : index
    %8 = vector.load %arg4[%c0_6, %c0_7] : memref<128x16xf32, #tpu.memory_space<vmem>>, vector<128x16xf32>
    %cst_8 = arith.constant dense<0.000000e+00> : vector<8x16xf32>
    %9 = tpu.matmul %7, %8, %cst_8 {dimension_numbers = #tpu.dot_dimension_numbers<[1], [0], [0], [1], [0, 0, 1, 1], [], []>} : vector<8x128xf32>, vector<128x16xf32>, vector<8x16xf32> -> vector<8x16xf32>
    %c0_9 = arith.constant 0 : index
    %c0_10 = arith.constant 0 : index
    %10 = vector.load %arg5[%c0_9, %c0_10] : memref<1x16xf32, #tpu.memory_space<vmem>>, vector<1x16xf32>
    %11 = vector.broadcast %10 : vector<1x16xf32> to vector<8x16xf32>
    %12 = arith.addf %9, %11 : vector<8x16xf32>
    %c0_11 = arith.constant 0 : index
    %c0_12 = arith.constant 0 : index
    %13 = vector.load %arg6[%c0_11, %c0_12] : memref<8x16xf32, #tpu.memory_space<vmem>>, vector<8x16xf32>
    tpu.vector_store %arg6[%c0_11, %c0_12], %12 {strides = array<i32>} : memref<8x16xf32, #tpu.memory_space<vmem>>, vector<8x16xf32>,
    return
  }
  func.func @transform_0(%arg0: i32) -> (i32, i32) {
    %c0_i32 = arith.constant 0 : i32
    %c0_i32_0 = arith.constant 0 : i32
    return %arg0, %c0_i32 : i32, i32
  }
  func.func @transform_1(%arg0: i32) -> (i32, i32) {
    %c0_i32 = arith.constant 0 : i32
    %c0_i32_0 = arith.constant 0 : i32
    %c0_i32_1 = arith.constant 0 : i32
    return %c0_i32, %c0_i32_0 : i32, i32
  }
  func.func @transform_2(%arg0: i32) -> (i32, i32) {
    %c0_i32 = arith.constant 0 : i32
    %c0_i32_0 = arith.constant 0 : i32
    %c0_i32_1 = arith.constant 0 : i32
    return %c0_i32, %c0_i32_0 : i32, i32
  }
  func.func @transform_3(%arg0: i32) -> (i32, i32) {
    %c0_i32 = arith.constant 0 : i32
    %c0_i32_0 = arith.constant 0 : i32
    %c0_i32_1 = arith.constant 0 : i32
    return %c0_i32, %c0_i32_0 : i32, i32
  }
  func.func @transform_4(%arg0: i32) -> (i32, i32) {
    %c0_i32 = arith.constant 0 : i32
    %c0_i32_0 = arith.constant 0 : i32
    %c0_i32_1 = arith.constant 0 : i32
    return %c0_i32, %c0_i32_0 : i32, i32
  }
  func.func @transform_5(%arg0: i32) -> (i32, i32) {
    %c0_i32 = arith.constant 0 : i32
    %c0_i32_0 = arith.constant 0 : i32
    return %arg0, %c0_i32 : i32, i32
  }
}

</mosaic_0001>

<bundles_post_ra>
// kernel: tpu_custom_call.1
= control target key start
LH: loop header
LB: loop body
LE: loop exit
PB: predicated region body
PF: predicated region fallthrough
CT: control target
= control target key end

     0   :  { %v346_v3 = vmov 0.0|0.0   ;;  %vm347_vm0 = vmmov 0   ;;  %v348_v6 = vmov 0.0   ;;  %s461_s0 = inlined_call_operand.vmem [shape: f32[8,32], index: 0, kind: input, shape index: {}]   ;;  %s462_s1 = inlined_call_operand.vmem [shape: f32[32,128], index: 1, kind: input, shape index: {}]   ;;  %s463_s2 = inlined_call_operand.vmem [shape: f32[1,128], index: 2, kind: input, shape index: {}]   ;;  %s464_s3 = inlined_call_operand.vmem [shape: f32[128,16], index: 3, kind: input, shape index: {}]   ;;  %s465_s4 = inlined_call_operand.vmem [shape: f32[1,16], index: 4, kind: input, shape index: {}]   ;;  %s466_s5 = inlined_call_operand.hbm [shape: f32[8,16], index: 5, kind: output, shape index: {}]  }
   0x1   :  { %v22_v0 = vld [vmem:[%s462_s1] sm:$0xff]  ;;  %v23_v1 = vld [vmem:[%s462_s1 + $0x8] sm:$0xff]  ;;  %v24_v2 = vld [vmem:[%s462_s1 + $0x10] sm:$0xff]  ;;  %288 = vmatprep.subr.bf16.mxu0 %v346_v3  ;;  %250 = vmatprep.mubr.msk.f32.mxu0 %vm347_vm0, %v348_v6 }
   0x2   :  { %v289_v4 = vpack.c.bf16 %v23_v1, %v22_v0  ;;  %v25_v5 = vld [vmem:[%s462_s1 + $0x18] sm:$0xff]  ;;  %v108_v7 = vld [vmem:[%s464_s3] sm:$0xff]  ;;  %294 = vmatprep.subr.bf16.mxu1 %v346_v3  ;;  %v109_v8 = vld [vmem:[%s464_s3 + $0x8] sm:$0xff]  ;;  %285 = vmatprep.mubr.msk.f32.mxu1 %vm347_vm0, %v348_v6 }
   0x3   :  { %v110_v9 = vld [vmem:[%s464_s3 + $0x10] sm:$0xff]  ;;  %v111_v10 = vld [vmem:[%s464_s3 + $0x18] sm:$0xff]  ;;  %v292_v11 = vpack.c.bf16 %v25_v5, %v24_v2  ;;  %v295_v12 = vpack.c.bf16 %v109_v8, %v108_v7  ;;  %v112_v14 = vld [vmem:[%s464_s3 + $0x20] sm:$0xff] }
   0x4   :  { %290 = vmatpush3.bf16.msra.mxu0 %v289_v4  ;;  %v298_v13 = vpack.c.bf16 %v111_v10, %v110_v9  ;;  %v113_v15 = vld [vmem:[%s464_s3 + $0x28] sm:$0xff] }
   0x5   :  { %291 = vmatprep.subr.bf16.mxu0 %v346_v3  ;;  %296 = vmatpush3.bf16.msra.mxu1 %v295_v12 }
   0x6   :  { %297 = vmatprep.subr.bf16.mxu1 %v346_v3 }
   0x7   :  { %10 = vsyncpa [#allocation3], 0  ;;  %v21_v16 = vld [vmem:[%s461_s0] sm:$0xff]  ;;  %vm33_vm1 = vcmask 261120   ;;  %v301_v17 = vpack.c.bf16 %v113_v15, %v112_v14  ;;  %v114_v18 = vld [vmem:[%s464_s3 + $0x30] sm:$0xff]  ;;  %s349_s11 = smov [#allocation2]  }
   0x8   :  { %293 = vmatpush3.bf16.msra.mxu0 %v292_v11  ;;  %v115_v19 = vld [vmem:[%s464_s3 + $0x38] sm:$0xff]  ;;  %v116_v21 = vld [vmem:[%s464_s3 + $0x40] sm:$0xff]  ;;  %v117_v22 = vld [vmem:[%s464_s3 + $0x48] sm:$0xff]  ;;  %s209_s12 = sshll.u32 %s349_s11, 4  ;;  %vm201_vm2 = vcmask 130048   ;;  %s210_s12 = int_to_ptr.vmem [resolvable:$true] %s209_s12 }
   0x9   :  { %299 = vmatpush3.bf16.msra.mxu1 %v298_v13  ;;  %v304_v20 = vpack.c.bf16 %v115_v19, %v114_v18  ;;  %v307_v23 = vpack.c.bf16 %v117_v22, %v116_v21  ;;  %v118_v24 = vld [vmem:[%s464_s3 + $0x50] sm:$0xff]  ;;  %v119_v25 = vld [vmem:[%s464_s3 + $0x58] sm:$0xff]  ;;  %v120_v27 = vld [vmem:[%s464_s3 + $0x60] sm:$0xff]  ;;  %p327_p1 = scmp.lt.s32.totalorder %s210_s12, %s210_s12 }
   0xa   :  { %300 = vmatprep.subr.bf16.mxu1 %v346_v3  ;;  %v310_v26 = vpack.c.bf16 %v119_v25, %v118_v24  ;;  %v121_v28 = vld [vmem:[%s464_s3 + $0x68] sm:$0xff]  ;;  %v122_v30 = vld [vmem:[%s464_s3 + $0x70] sm:$0xff]  ;;  %v123_v31 = vld [vmem:[%s464_s3 + $0x78] sm:$0xff]  ;;  %s322_s3 = scalar_lea.vmem %s210_s12, 128 }
   0xb   :  { %251 = vmatmul.mubr.msk.f32.vlgmr.msra.gmra.mrb[0].mxu0 %vm33_vm1, %v21_v16  ;;  %v313_v29 = vpack.c.bf16 %v121_v28, %v120_v27  ;;  %v316_v32 = vpack.c.bf16 %v123_v31, %v122_v30  ;;  %v217_v33 = vld [vmem:[%s463_s2] ss:$0 sm:$0xff]  ;;  %p323_p0 = scmp.ne.s32.totalorder %s210_s12, %s322_s3  ;;  %p328_p2 = scmp.lt.s32.totalorder %s322_s3, %s322_s3 }
   0xc   :  { %v219_v38 = vld [vmem:[%s465_s4] ss:$0 sm:$0xff] }
   0xd   :  { %302 = vmatpush3.bf16.msra.mxu1 %v301_v17  ;;  %p329_p3 = por %p328_p2, %p327_p1 }
   0xe   :  { %303 = vmatprep.subr.bf16.mxu1 %v346_v3 }
   0xf   :  { %p330_p4 = pnand %p329_p3, %p323_p0 }
  0x11   :  { %305 = vmatpush3.bf16.msra.mxu1 %v304_v20 }
  0x12   :  { %306 = vmatprep.subr.bf16.mxu1 %v346_v3 }
  0x15   :  { %308 = vmatpush3.bf16.msra.mxu1 %v307_v23 }
  0x16   :  { %309 = vmatprep.subr.bf16.mxu1 %v346_v3 }
  0x19   :  { %311 = vmatpush3.bf16.msra.mxu1 %v310_v26 }
  0x1a   :  { %312 = vmatprep.subr.bf16.mxu1 %v346_v3 }
  0x1d   :  { %314 = vmatpush3.bf16.msra.mxu1 %v313_v29 }
  0x1e   :  { %315 = vmatprep.subr.bf16.mxu1 %v346_v3 }
  0x21   :  { %317 = vmatpush3.bf16.msra.mxu1 %v316_v32 }
  0xde   :  { %v103_v34 = vpop.f32.mrb[0].mxu0 }
  0xdf   :  { %v104_v35 = vadd.f32 %v217_v33, %v103_v34  ;;  %v252_v36 = vpop.f32.mrb[1].mxu0 }
  0xe1   :  { %v107_v37 = vmax.f32 %v104_v35, 0.0 }
  0xe3   :  { %286 = vmatmul.mubr.f32.vlgmr.msra.gmra.mrb[0].mxu1 %v107_v37 }
 0x1b6   :  { %v197_v39 = vpop.f32.mrb[0].mxu1 }
 0x1b7   :  { %v198_v40 = vadd.f32 %v219_v38, %v197_v39  ;;  %v287_v41 = vpop.f32.mrb[1].mxu1 }
 0x1b9   :  { %202 = vst.msk [vmem:[#allocation2] sm:$0xff] %vm201_vm2, %v198_v40 }
 0x1ba   :  { %333 = shalt.err (!%p330_p4)
}
 0x1bb   :  { %s334_s14 = scalar_lea.hbm %s466_s5, 128 }
 0x1bc   :  { %p335_p5 = scmp.ne.s32.totalorder %s466_s5, %s334_s14  ;;  %p338_p6 = scmp.lt.u32.totalorder %s334_s14, %s466_s5 }
 0x1be   :  { %p340_p7 = pnand %p338_p6, %p335_p5 }
 0x1c0   :  { %343 = shalt.err (!%p340_p7)
}
 0x1c1   :  { %212 = dma.vmem_to_hbm [thread:$0]  %s210_s12, 128, %s466_s5, [#allocation3]  }
 0x1c2   :  { %344 = dma.done.wait [#allocation3], 128  }
 0x1c3   :  { %345 = vsyncadd [#allocation3], 4294967168 }
 0x1c4   :  { %216 = vsyncpa [#allocation3], 1 }

</bundles_post_ra>
